<compile_context>
chip_gen: v7x
topology: tpu7x:2x2x1
jax: 0.10.0
libtpu: 0.0.40
codegen_flags: <defaults>
</compile_context>

<pallas_src>
import functools

import jax
import jax.numpy as jnp
from jax.experimental import pallas as pl
from jax.experimental.pallas import tpu as pltpu


LANE = 128  # vreg lane width; small per-feature vectors are packed to this width


def _round_up(x, m):
    return (x + m - 1) // m * m


def detector_kernel(x_ref, w1_ref, w2_ref, w3_ref, w4_ref, vec_ref, out_ref,
                    *, h1, h2, h3):
    """One batch tile of the forward pass.

    vec_ref: lane-dense (8, LANE) f32 slab holding all bias vectors
      row 0: b1' (BN-folded)   row 1: b2' (BN-folded)   row 2: b3' (BN-folded)
      row 3: b4 zero-padded to LANE, with vec[3, num_classes] = 1.0 so the
             attention weight (== 1.0 exactly) lands in output column nc.
    out_ref: lane-dense (TILE_B, LANE) slab; cols [0:nc] logits, col nc = attn.
    """
    xb = x_ref[...].astype(jnp.bfloat16)     # attended_input == x (attn == 1.0)

    # ---- main MLP: (Linear -> BN(eval, folded) -> ReLU -> Dropout[id]) x3, Linear ----
    h = jnp.maximum(
        jnp.dot(xb, w1_ref[...], preferred_element_type=jnp.float32)
        + vec_ref[0:1, 0:h1], 0.0)
    h = jnp.maximum(
        jnp.dot(h.astype(jnp.bfloat16), w2_ref[...],
                preferred_element_type=jnp.float32)
        + vec_ref[1:2, 0:h2], 0.0)
    h = jnp.maximum(
        jnp.dot(h.astype(jnp.bfloat16), w3_ref[...],
                preferred_element_type=jnp.float32)
        + vec_ref[2:3, 0:h3], 0.0)
    # classifier weights are zero-padded to LANE output columns; bias row 3
    # already contains the 1.0 attention weight at column nc, so this single
    # lane-dense store covers logits + attention with no extra select.
    out_ref[...] = (jnp.dot(h.astype(jnp.bfloat16), w4_ref[...],
                            preferred_element_type=jnp.float32)
                    + vec_ref[3:4, :])


def enhanced_solar_fault_detector(x, packed, *, input_size, hidden_sizes,
                                  num_classes, tile_b=256):
    """x: (B, F) f32. packed: dict from pack_params. Returns (output, attention_weights)."""
    assert len(hidden_sizes) == 3, "kernel is written for the default 3 hidden layers"
    h1, h2, h3 = hidden_sizes
    B, F = x.shape
    assert F == input_size

    # pad batch to a multiple of the tile (rows of zeros; sliced off afterwards)
    Bp = _round_up(B, 8)
    tb = min(int(tile_b), Bp)
    assert tb % 8 == 0
    Bp = _round_up(Bp, tb)
    if Bp != B:
        x = jnp.pad(x, ((0, Bp - B), (0, 0)))

    grid = (Bp // tb,)

    def full(shape):  # whole-array block, constant index -> stays VMEM-resident
        return pl.BlockSpec(shape, lambda i: (0, 0))

    slab = pl.pallas_call(
        functools.partial(detector_kernel, h1=h1, h2=h2, h3=h3),
        out_shape=jax.ShapeDtypeStruct((Bp, LANE), jnp.float32),
        grid=grid,
        in_specs=[
            pl.BlockSpec((tb, F), lambda i: (i, 0)),   # x batch tile
            full(packed["w1"].shape),
            full(packed["w2"].shape),
            full(packed["w3"].shape),
            full(packed["w4"].shape),
            full(packed["vec"].shape),
        ],
        out_specs=pl.BlockSpec((tb, LANE), lambda i: (i, 0)),
        compiler_params=pltpu.CompilerParams(
            dimension_semantics=("parallel",)),   # batch axis shards across TCs
    )(x, packed["w1"], packed["w2"], packed["w3"], packed["w4"], packed["vec"])

    out = slab[:B, :num_classes]
    attn = slab[:B, num_classes:num_classes + 1]
    return out, attn


def init_params(key, input_size, hidden_sizes, num_classes, eps=1e-5):
    """Deterministic synthetic parameters. Linear weights stored as (in, out);
    BatchNorm1d (eval mode) expressed as per-feature scale/shift."""
    dims = [input_size] + list(hidden_sizes)
    keys = iter(jax.random.split(key, 64))
    p = {}

    def lin(kin, kout):
        w = jax.random.normal(next(keys), (kin, kout), jnp.float32) * 0.1
        b = jax.random.normal(next(keys), (1, kout), jnp.float32) * 0.05
        return w, b

    # attention: Linear(F, H0) -> tanh -> Linear(H0, 1) -> softmax(dim=1)
    # (kept for the pure-JAX reference; the kernel exploits softmax(dim=1) == 1.0)
    p["wa1"], p["ba1"] = lin(input_size, hidden_sizes[0])
    p["wa2"], p["ba2"] = lin(hidden_sizes[0], 1)

    # main MLP hidden blocks (Linear + BN)
    for i in range(len(hidden_sizes)):
        w, b = lin(dims[i], dims[i + 1])
        h = dims[i + 1]
        gamma = 1.0 + 0.1 * jax.random.normal(next(keys), (1, h), jnp.float32)
        beta = 0.05 * jax.random.normal(next(keys), (1, h), jnp.float32)
        running_mean = 0.1 * jax.random.normal(next(keys), (1, h), jnp.float32)
        running_var = jnp.abs(jax.random.normal(next(keys), (1, h), jnp.float32)) + 0.5
        scale = gamma / jnp.sqrt(running_var + eps)
        shift = beta - running_mean * scale
        p[f"w{i+1}"], p[f"b{i+1}"] = w, b
        p[f"s{i+1}"], p[f"t{i+1}"] = scale, shift

    # final classifier head
    p["w4"], p["b4"] = lin(hidden_sizes[-1], num_classes)
    return p


def pack_params(p, input_size, hidden_sizes, num_classes):
    """Wrapper-side parameter glue: fold eval-mode BatchNorm into the Linears,
    cast matmul weights to bf16, zero-pad the classifier to LANE columns, and
    pack every bias vector into a single (8, LANE) f32 slab. The slab also
    carries a 1.0 at [3, num_classes] so the attention weight is emitted by the
    final matmul's bias add instead of a separate select."""
    h1, h2, h3 = hidden_sizes
    assert h1 <= LANE and h2 <= LANE and h3 <= LANE and num_classes + 1 <= LANE

    # fold BN (eval) into the preceding Linear: W' = W * s, b' = b * s + t
    w1f = p["w1"] * p["s1"]; b1f = p["b1"] * p["s1"] + p["t1"]
    w2f = p["w2"] * p["s2"]; b2f = p["b2"] * p["s2"] + p["t2"]
    w3f = p["w3"] * p["s3"]; b3f = p["b3"] * p["s3"] + p["t3"]

    # classifier padded to LANE output columns (zeros beyond num_classes)
    w4p = jnp.zeros((h3, LANE), jnp.float32).at[:, :num_classes].set(p["w4"])

    vec = jnp.zeros((8, LANE), jnp.float32)
    vec = vec.at[0, :h1].set(b1f[0])
    vec = vec.at[1, :h2].set(b2f[0])
    vec = vec.at[2, :h3].set(b3f[0])
    vec = vec.at[3, :num_classes].set(p["b4"][0])
    vec = vec.at[3, num_classes].set(1.0)     # attention weight == 1.0 exactly

    bf16 = jnp.bfloat16
    return {
        "w1": w1f.astype(bf16),
        "w2": w2f.astype(bf16),
        "w3": w3f.astype(bf16),
        "w4": w4p.astype(bf16),
        "vec": vec,
    }


def reference_forward(x, params):
    """Pure-JAX f32 reference of the same forward pass (full attention branch,
    real softmax, unfused BatchNorm) for the correctness check."""
    a = jnp.tanh(x @ params["wa1"] + params["ba1"])
    z = a @ params["wa2"] + params["ba2"]
    attn = jax.nn.softmax(z, axis=1)
    h = x * attn
    for i in (1, 2, 3):
        h = h @ params[f"w{i}"] + params[f"b{i}"]
        h = jnp.maximum(h * params[f"s{i}"] + params[f"t{i}"], 0.0)
    out = h @ params["w4"] + params["b4"]
    return out, attn


if __name__ == "__main__":
    B = 512                       # demo batch: 2 grid steps of 256 rows each
    input_size = 16
    hidden_sizes = [128, 64, 32]
    num_classes = 5

    key = jax.random.PRNGKey(0)
    kx, kp = jax.random.split(key)
    x = jax.random.normal(kx, (B, input_size), jnp.float32)
    params = init_params(kp, input_size, hidden_sizes, num_classes)
    packed = pack_params(params, input_size, hidden_sizes, num_classes)

    fwd = jax.jit(functools.partial(
        enhanced_solar_fault_detector, input_size=input_size,
        hidden_sizes=tuple(hidden_sizes), num_classes=num_classes, tile_b=256))
    out, attn = fwd(x, packed)
    jax.block_until_ready((out, attn))

    ref_out, ref_attn = reference_forward(x, params)
    assert out.shape == (B, num_classes) and attn.shape == (B, 1)
    assert jnp.allclose(attn, ref_attn)                        # exactly 1.0 on both sides
    assert jnp.allclose(out, ref_out, atol=3e-2, rtol=3e-2)    # bf16 matmuls, f32 accumulate

    # TODO(synk): softmax(dim=1) over a width-1 logit is identically 1.0 -- the
    # attention branch is a no-op; likely an upstream bug (dim=0 intended?).
    print("KERNEL_OK")
</pallas_src>

<mosaic_0001>
module attributes {stable_mosaic.version = 11 : i64} {
  func.func @detector_kernel(%arg0: i32, %arg1: memref<256x16xf32, #tpu.memory_space<vmem>>, %arg2: memref<16x128xbf16, #tpu.memory_space<vmem>>, %arg3: memref<128x64xbf16, #tpu.memory_space<vmem>>, %arg4: memref<64x32xbf16, #tpu.memory_space<vmem>>, %arg5: memref<32x128xbf16, #tpu.memory_space<vmem>>, %arg6: memref<8x128xf32, #tpu.memory_space<vmem>>, %arg7: memref<256x128xf32, #tpu.memory_space<vmem>>) attributes {dimension_semantics = [#tpu.dimension_semantics<parallel>], iteration_bounds = array<i64: 2>, scalar_prefetch = 0 : i64, scratch_operands = 0 : i64, tpu.core_type = #tpu.core_type<tc>, window_params = [{transform_indices = @transform_0, window_bounds = array<i64: 256, 16>}, {pipeline_mode = #tpu.pipeline_mode<synchronous>, transform_indices = @transform_1, window_bounds = array<i64: 16, 128>}, {pipeline_mode = #tpu.pipeline_mode<synchronous>, transform_indices = @transform_2, window_bounds = array<i64: 128, 64>}, {pipeline_mode = #tpu.pipeline_mode<synchronous>, transform_indices = @transform_3, window_bounds = array<i64: 64, 32>}, {pipeline_mode = #tpu.pipeline_mode<synchronous>, transform_indices = @transform_4, window_bounds = array<i64: 32, 128>}, {pipeline_mode = #tpu.pipeline_mode<synchronous>, transform_indices = @transform_5, window_bounds = array<i64: 8, 128>}, {transform_indices = @transform_6, window_bounds = array<i64: 256, 128>}]} {
    %c0 = arith.constant 0 : index
    %c0_0 = arith.constant 0 : index
    %0 = vector.load %arg1[%c0, %c0_0] : memref<256x16xf32, #tpu.memory_space<vmem>>, vector<256x16xf32>
    %1 = arith.truncf %0 : vector<256x16xf32> to vector<256x16xbf16>
    %c0_1 = arith.constant 0 : index
    %c0_2 = arith.constant 0 : index
    %2 = vector.load %arg2[%c0_1, %c0_2] : memref<16x128xbf16, #tpu.memory_space<vmem>>, vector<16x128xbf16>
    %cst = arith.constant dense<0.000000e+00> : vector<256x128xf32>
    %3 = tpu.matmul %1, %2, %cst {dimension_numbers = #tpu.dot_dimension_numbers<[1], [0], [0], [1], [0, 0, 1, 1], [], []>} : vector<256x16xbf16>, vector<16x128xbf16>, vector<256x128xf32> -> vector<256x128xf32>
    %c0_3 = arith.constant 0 : index
    %c0_4 = arith.constant 0 : index
    %4 = vector.load %arg6[%c0_3, %c0_4] : memref<8x128xf32, #tpu.memory_space<vmem>>, vector<1x128xf32>
    %5 = vector.broadcast %4 : vector<1x128xf32> to vector<256x128xf32>
    %6 = arith.addf %3, %5 : vector<256x128xf32>
    %cst_5 = arith.constant 0.000000e+00 : f32
    %7 = vector.broadcast %cst_5 : f32 to vector<256x128xf32>
    %8 = arith.maximumf %6, %7 : vector<256x128xf32>
    %9 = arith.truncf %8 : vector<256x128xf32> to vector<256x128xbf16>
    %c0_6 = arith.constant 0 : index
    %c0_7 = arith.constant 0 : index
    %10 = vector.load %arg3[%c0_6, %c0_7] : memref<128x64xbf16, #tpu.memory_space<vmem>>, vector<128x64xbf16>
    %cst_8 = arith.constant dense<0.000000e+00> : vector<256x64xf32>
    %11 = tpu.matmul %9, %10, %cst_8 {dimension_numbers = #tpu.dot_dimension_numbers<[1], [0], [0], [1], [0, 0, 1, 1], [], []>} : vector<256x128xbf16>, vector<128x64xbf16>, vector<256x64xf32> -> vector<256x64xf32>
    %c1 = arith.constant 1 : index
    %c0_9 = arith.constant 0 : index
    %12 = vector.load %arg6[%c1, %c0_9] : memref<8x128xf32, #tpu.memory_space<vmem>>, vector<1x64xf32>
    %13 = vector.broadcast %12 : vector<1x64xf32> to vector<256x64xf32>
    %14 = arith.addf %11, %13 : vector<256x64xf32>
    %cst_10 = arith.constant 0.000000e+00 : f32
    %15 = vector.broadcast %cst_10 : f32 to vector<256x64xf32>
    %16 = arith.maximumf %14, %15 : vector<256x64xf32>
    %17 = arith.truncf %16 : vector<256x64xf32> to vector<256x64xbf16>
    %c0_11 = arith.constant 0 : index
    %c0_12 = arith.constant 0 : index
    %18 = vector.load %arg4[%c0_11, %c0_12] : memref<64x32xbf16, #tpu.memory_space<vmem>>, vector<64x32xbf16>
    %cst_13 = arith.constant dense<0.000000e+00> : vector<256x32xf32>
    %19 = tpu.matmul %17, %18, %cst_13 {dimension_numbers = #tpu.dot_dimension_numbers<[1], [0], [0], [1], [0, 0, 1, 1], [], []>} : vector<256x64xbf16>, vector<64x32xbf16>, vector<256x32xf32> -> vector<256x32xf32>
    %c2 = arith.constant 2 : index
    %c0_14 = arith.constant 0 : index
    %20 = vector.load %arg6[%c2, %c0_14] : memref<8x128xf32, #tpu.memory_space<vmem>>, vector<1x32xf32>
    %21 = vector.broadcast %20 : vector<1x32xf32> to vector<256x32xf32>
    %22 = arith.addf %19, %21 : vector<256x32xf32>
    %cst_15 = arith.constant 0.000000e+00 : f32
    %23 = vector.broadcast %cst_15 : f32 to vector<256x32xf32>
    %24 = arith.maximumf %22, %23 : vector<256x32xf32>
    %25 = arith.truncf %24 : vector<256x32xf32> to vector<256x32xbf16>
    %c0_16 = arith.constant 0 : index
    %c0_17 = arith.constant 0 : index
    %26 = vector.load %arg5[%c0_16, %c0_17] : memref<32x128xbf16, #tpu.memory_space<vmem>>, vector<32x128xbf16>
    %cst_18 = arith.constant dense<0.000000e+00> : vector<256x128xf32>
    %27 = tpu.matmul %25, %26, %cst_18 {dimension_numbers = #tpu.dot_dimension_numbers<[1], [0], [0], [1], [0, 0, 1, 1], [], []>} : vector<256x32xbf16>, vector<32x128xbf16>, vector<256x128xf32> -> vector<256x128xf32>
    %c3 = arith.constant 3 : index
    %c0_19 = arith.constant 0 : index
    %28 = vector.load %arg6[%c3, %c0_19] : memref<8x128xf32, #tpu.memory_space<vmem>>, vector<1x128xf32>
    %29 = vector.broadcast %28 : vector<1x128xf32> to vector<256x128xf32>
    %30 = arith.addf %27, %29 : vector<256x128xf32>
    %c0_20 = arith.constant 0 : index
    %c0_21 = arith.constant 0 : index
    %31 = vector.load %arg7[%c0_20, %c0_21] : memref<256x128xf32, #tpu.memory_space<vmem>>, vector<256x128xf32>
    tpu.vector_store %arg7[%c0_20, %c0_21], %30 {strides = array<i32>} : memref<256x128xf32, #tpu.memory_space<vmem>>, vector<256x128xf32>,
    return
  }
  func.func @transform_0(%arg0: i32) -> (i32, i32) {
    %c0_i32 = arith.constant 0 : i32
    %c0_i32_0 = arith.constant 0 : i32
    return %arg0, %c0_i32 : i32, i32
  }
  func.func @transform_1(%arg0: i32) -> (i32, i32) {
    %c0_i32 = arith.constant 0 : i32
    %c0_i32_0 = arith.constant 0 : i32
    %c0_i32_1 = arith.constant 0 : i32
    return %c0_i32, %c0_i32_0 : i32, i32
  }
  func.func @transform_2(%arg0: i32) -> (i32, i32) {
    %c0_i32 = arith.constant 0 : i32
    %c0_i32_0 = arith.constant 0 : i32
    %c0_i32_1 = arith.constant 0 : i32
    return %c0_i32, %c0_i32_0 : i32, i32
  }
  func.func @transform_3(%arg0: i32) -> (i32, i32) {
    %c0_i32 = arith.constant 0 : i32
    %c0_i32_0 = arith.constant 0 : i32
    %c0_i32_1 = arith.constant 0 : i32
    return %c0_i32, %c0_i32_0 : i32, i32
  }
  func.func @transform_4(%arg0: i32) -> (i32, i32) {
    %c0_i32 = arith.constant 0 : i32
    %c0_i32_0 = arith.constant 0 : i32
    %c0_i32_1 = arith.constant 0 : i32
    return %c0_i32, %c0_i32_0 : i32, i32
  }
  func.func @transform_5(%arg0: i32) -> (i32, i32) {
    %c0_i32 = arith.constant 0 : i32
    %c0_i32_0 = arith.constant 0 : i32
    %c0_i32_1 = arith.constant 0 : i32
    return %c0_i32, %c0_i32_0 : i32, i32
  }
  func.func @transform_6(%arg0: i32) -> (i32, i32) {
    %c0_i32 = arith.constant 0 : i32
    %c0_i32_0 = arith.constant 0 : i32
    return %arg0, %c0_i32 : i32, i32
  }
}

</mosaic_0001>

<bundles_post_ra>
// kernel: enhanced_solar_fault_detector.1
= control target key start
LH: loop header
LB: loop body
LE: loop exit
PB: predicated region body
PF: predicated region fallthrough
CT: control target
= control target key end

     0   :  { %s1852_s21 = smov 0   ;;  %s2185_s0 = inlined_call_operand.vmem [shape: f32[512,16], index: 0, kind: input, shape index: {}]   ;;  %s2186_s1 = inlined_call_operand.vmem [shape: bf16[16,128], index: 1, kind: input, shape index: {}]   ;;  %s2187_s2 = inlined_call_operand.vmem [shape: bf16[128,64], index: 2, kind: input, shape index: {}]   ;;  %s2188_s3 = inlined_call_operand.vmem [shape: bf16[64,32], index: 3, kind: input, shape index: {}]   ;;  %s2189_s4 = inlined_call_operand.vmem [shape: bf16[32,128], index: 4, kind: input, shape index: {}]   ;;  %s2190_s5 = inlined_call_operand.vmem [shape: f32[8,128], index: 5, kind: input, shape index: {}]   ;;  %s2191_s6 = inlined_call_operand.vmem [shape: f32[512,128], index: 6, kind: output, shape index: {}]  }
   0x1 LB: > { %s1467_s22 = sadd.s32 4294967295, %s1815_s21   ;;  %p1471_p0 = scmp.ge.s32.totalorder %s1815_s21, 1  ;;  %s1815_s21 = sphi %s1852_s21, %s16_s21  }
   0x2   : > { %p213_p1 = scmp.lt.s32.totalorder %s1815_s21, 3 }
   0x4   : > { %p214_p2 = pnand %p1471_p0, %p213_p1 }
   0x5   : > { %v1794_v0 = vld [vmem:[%s2186_s1] sm:$0xff] (!%p214_p2)   ;;  %s1472_s25 = sshll.u32 (!%p214_p2), %s1467_s22, 5  ;;  %v1796_v2 = vld [vmem:[%s2187_s2 + $0x8] sm:$0xff] (!%p214_p2)   ;;  %v1797_v3 = vld [vmem:[%s2187_s2 + $0x10] sm:$0xff] (!%p214_p2)   ;;  %vm317_vm0 = vcmask (!%p214_p2), 130048   ;;  %vm890_vm1 = vcmask (!%p214_p2), 523264  }
   0x6   : > { %217 = sbr.rel (%p214_p2) target bundleno = 960 (0x3c0), region = 44  ;;  %p244_p3 = scmp.lt.s32.totalorder (!%p214_p2), %s1472_s25, 63  ;;  %1624 = vmatprep.subr.bf16.mxu0 (!%p214_p2), %v1794_v0  ;;  %v1795_v1 = vld [vmem:[%s2187_s2] sm:$0xff] (!%p214_p2)   ;;  %v1798_v13 = vld [vmem:[%s2187_s2 + $0x18] sm:$0xff] (!%p214_p2)   ;;  %v1800_v21 = vld [vmem:[%s2187_s2 + $0x28] sm:$0xff] (!%p214_p2)   ;;  %vm1169_vm2 = vcmask (!%p214_p2), 261120  }
   0x7   : > { %1625 = vmatpush3.bf16.msra.mxu0 (!%p214_p2), %v1794_v0  ;;  %1658 = vmatprep.subr.bf16.mxu1 (!%p214_p2), %v1795_v1  ;;  %v1799_v18 = vld [vmem:[%s2187_s2 + $0x20] sm:$0xff] (!%p214_p2)   ;;  %v1801_v55 = vld [vmem:[%s2187_s2 + $0x30] sm:$0xff] (!%p214_p2)   ;;  %v1802_v56 = vld [vmem:[%s2187_s2 + $0x38] sm:$0xff] (!%p214_p2)  }
   0x8   : > { %1659 = vmatpush3.bf16.msra.mxu1 (!%p214_p2), %v1795_v1  ;;  %v1803_v57 = vld [vmem:[%s2188_s3] sm:$0xff] (!%p214_p2)   ;;  %v1804_v58 = vld [vmem:[%s2188_s3 + $0x8] sm:$0xff] (!%p214_p2)   ;;  %v1805_v59 = vld [vmem:[%s2188_s3 + $0x10] sm:$0xff] (!%p214_p2)  }
   0x9   : > { %1660 = vmatprep.subr.bf16.mxu1 (!%p214_p2), %v1796_v2  ;;  %1706 = vmatprep.subr.bf16.mxu0 (!%p214_p2), %v1803_v57  ;;  %v1806_v60 = vld [vmem:[%s2188_s3 + $0x18] sm:$0xff] (!%p214_p2)   ;;  %v1960_v61 = vld [vmem:[%s2190_s5] ss:$0 sm:$0xff] (!%p214_p2) }
   0xc   : > { %1661 = vmatpush3.bf16.msra.mxu1 (!%p214_p2), %v1796_v2 }
   0xd   : > { %s2193_s25 = smov (!%p244_p3, %s1472_s25), 63  ;;  %1662 = vmatprep.subr.bf16.mxu1 %v1797_v3 }
   0xe   : > { %s1473_s30 = sshll.u32 %s2193_s25, 3 }
   0xf   : > { %s1877_s9 = scalar_lea.vmem %s2185_s0, %s1473_s30  ;;  %s2116_s24 = scalar_lea.vmem %s2191_s6, %s1473_s30 }
  0x10   : > { %v256_v4 = vld [vmem:[%s1877_s9] sm:$0xff]  ;;  %v257_v5 = vld [vmem:[%s1877_s9 + $0x8] sm:$0xff]  ;;  %v258_v6 = vld [vmem:[%s1877_s9 + $0x10] sm:$0xff]  ;;  %1663 = vmatpush3.bf16.msra.mxu1 %v1797_v3 }
  0x11   : > { %v288_v7 = vpack.c.bf16 %v257_v5, %v256_v4  ;;  %v259_v8 = vld [vmem:[%s1877_s9 + $0x18] sm:$0xff]  ;;  %v260_v9 = vld [vmem:[%s1877_s9 + $0x20] sm:$0xff]  ;;  %v261_v10 = vld [vmem:[%s1877_s9 + $0x28] sm:$0xff]  ;;  %1664 = vmatprep.subr.bf16.mxu1 %v1798_v13 }
  0x12   : > { %v289_v11 = vpack.c.bf16 %v259_v8, %v258_v6  ;;  %v290_v12 = vpack.c.bf16 %v261_v10, %v260_v9  ;;  %v262_v14 = vld [vmem:[%s1877_s9 + $0x30] sm:$0xff]  ;;  %v263_v15 = vld [vmem:[%s1877_s9 + $0x38] sm:$0xff]  ;;  %v264_v16 = vld [vmem:[%s1877_s9 + $0x40] sm:$0xff] }
  0x13   : > { %1626 = vmatprep.mubr.msk.bf16.mxu0 %vm317_vm0, %v288_v7  ;;  %v265_v17 = vld [vmem:[%s1877_s9 + $0x48] sm:$0xff]  ;;  %v291_v19 = vpack.c.bf16 %v263_v15, %v262_v14  ;;  %v266_v22 = vld [vmem:[%s1877_s9 + $0x50] sm:$0xff]  ;;  %v267_v23 = vld [vmem:[%s1877_s9 + $0x58] sm:$0xff] }
  0x14   : > { %1627 = vmatmul.mubr.msk.bf16.vlgmr.msra.gmra.mrb[0].mxu0 %vm317_vm0, %v289_v11  ;;  %v292_v20 = vpack.c.bf16 %v265_v17, %v264_v16  ;;  %1665 = vmatpush3.bf16.msra.mxu1 %v1798_v13  ;;  %v268_v24 = vld [vmem:[%s1877_s9 + $0x60] sm:$0xff]  ;;  %v269_v25 = vld [vmem:[%s1877_s9 + $0x68] sm:$0xff]  ;;  %v293_v26 = vpack.c.bf16 %v267_v23, %v266_v22  ;;  %v270_v28 = vld [vmem:[%s1877_s9 + $0x70] sm:$0xff] }
  0x15   : > { %1630 = vmatprep.mubr.msk.bf16.mxu0 %vm317_vm0, %v290_v12  ;;  %1666 = vmatprep.subr.bf16.mxu1 %v1799_v18  ;;  %v294_v27 = vpack.c.bf16 %v269_v25, %v268_v24  ;;  %v271_v29 = vld [vmem:[%s1877_s9 + $0x78] sm:$0xff]  ;;  %v272_v30 = vld [vmem:[%s1877_s9 + $0x80] sm:$0xff]  ;;  %v273_v31 = vld [vmem:[%s1877_s9 + $0x88] sm:$0xff] }
  0x16   : > { %v295_v32 = vpack.c.bf16 %v271_v29, %v270_v28  ;;  %v296_v33 = vpack.c.bf16 %v273_v31, %v272_v30  ;;  %v274_v34 = vld [vmem:[%s1877_s9 + $0x90] sm:$0xff]  ;;  %v275_v35 = vld [vmem:[%s1877_s9 + $0x98] sm:$0xff]  ;;  %v276_v36 = vld [vmem:[%s1877_s9 + $0xa0] sm:$0xff]  ;;  %1707 = vmatpush3.bf16.msra.mxu0 %v1803_v57 }
  0x17   : > { %v277_v37 = vld [vmem:[%s1877_s9 + $0xa8] sm:$0xff]  ;;  %v297_v38 = vpack.c.bf16 %v275_v35, %v274_v34  ;;  %v278_v40 = vld [vmem:[%s1877_s9 + $0xb0] sm:$0xff]  ;;  %v279_v41 = vld [vmem:[%s1877_s9 + $0xb8] sm:$0xff]  ;;  %1708 = vmatprep.subr.bf16.mxu0 %v1804_v58 }
  0x18   : > { %1667 = vmatpush3.bf16.msra.mxu1 %v1799_v18  ;;  %v298_v39 = vpack.c.bf16 %v277_v37, %v276_v36  ;;  %v280_v42 = vld [vmem:[%s1877_s9 + $0xc0] sm:$0xff]  ;;  %v281_v43 = vld [vmem:[%s1877_s9 + $0xc8] sm:$0xff]  ;;  %v299_v44 = vpack.c.bf16 %v279_v41, %v278_v40  ;;  %v282_v46 = vld [vmem:[%s1877_s9 + $0xd0] sm:$0xff] }
  0x19   : > { %1668 = vmatprep.subr.bf16.mxu1 %v1800_v21  ;;  %v300_v45 = vpack.c.bf16 %v281_v43, %v280_v42  ;;  %v283_v47 = vld [vmem:[%s1877_s9 + $0xd8] sm:$0xff]  ;;  %v284_v48 = vld [vmem:[%s1877_s9 + $0xe0] sm:$0xff]  ;;  %v285_v49 = vld [vmem:[%s1877_s9 + $0xe8] sm:$0xff] }
  0x1a   : > { %v301_v50 = vpack.c.bf16 %v283_v47, %v282_v46  ;;  %v302_v51 = vpack.c.bf16 %v285_v49, %v284_v48  ;;  %v286_v52 = vld [vmem:[%s1877_s9 + $0xf0] sm:$0xff]  ;;  %v287_v53 = vld [vmem:[%s1877_s9 + $0xf8] sm:$0xff]  ;;  %1709 = vmatpush3.bf16.msra.mxu0 %v1804_v58 }
  0x1b   : > { %v303_v54 = vpack.c.bf16 %v287_v53, %v286_v52  ;;  %1710 = vmatprep.subr.bf16.mxu0 %v1805_v59 }
  0x1c   : > { %1631 = vmatmul.mubr.msk.bf16.gmra.mrb[4].mxu0 %vm317_vm0, %v291_v19  ;;  %1669 = vmatpush3.bf16.msra.mxu1 %v1800_v21 }
  0x1d   : > { %1634 = vmatprep.mubr.msk.bf16.mxu0 %vm317_vm0, %v292_v20  ;;  %1670 = vmatprep.subr.bf16.mxu1 %v1801_v55 }
  0x1e   : > { %1711 = vmatpush3.bf16.msra.mxu0 %v1805_v59 }
  0x1f   : > { %1712 = vmatprep.subr.bf16.mxu0 %v1806_v60 }
  0x20   : > { %1671 = vmatpush3.bf16.msra.mxu1 %v1801_v55 }
  0x21   : > { %1672 = vmatprep.subr.bf16.mxu1 %v1802_v56 }
  0x22   : > { %1713 = vmatpush3.bf16.msra.mxu0 %v1806_v60 }
  0x24   : > { %1635 = vmatmul.mubr.msk.bf16.gmra.mrb[8].mxu0 %vm317_vm0, %v293_v26  ;;  %1673 = vmatpush3.bf16.msra.mxu1 %v1802_v56 }
  0x25   : > { %1638 = vmatprep.mubr.msk.bf16.mxu0 %vm317_vm0, %v294_v27 }
  0x2c   : > { %1639 = vmatmul.mubr.msk.bf16.gmra.mrb[12].mxu0 %vm317_vm0, %v295_v32 }
  0x2d   : > { %1642 = vmatprep.mubr.msk.bf16.mxu0 %vm317_vm0, %v296_v33 }
  0x34   : > { %1643 = vmatmul.mubr.msk.bf16.gmra.mrb[16].mxu0 %vm317_vm0, %v297_v38 }
  0x35   : > { %1646 = vmatprep.mubr.msk.bf16.mxu0 %vm317_vm0, %v298_v39 }
  0x3c   : > { %1647 = vmatmul.mubr.msk.bf16.gmra.mrb[20].mxu0 %vm317_vm0, %v299_v44 }
  0x3d   : > { %1650 = vmatprep.mubr.msk.bf16.mxu0 %vm317_vm0, %v300_v45 }
  0x44   : > { %1651 = vmatmul.mubr.msk.bf16.gmra.mrb[24].mxu0 %vm317_vm0, %v301_v50 }
  0x45   : > { %1654 = vmatprep.mubr.msk.bf16.mxu0 %vm317_vm0, %v302_v51 }
  0x4c   : > { %1655 = vmatmul.mubr.msk.bf16.gmra.mrb[28].mxu0 %vm317_vm0, %v303_v54 }
  0xe7   : > { %v1628_v62 = vpop.f32.mrb[0].mxu0 }
  0xe8   : > { %v409_v63 = vadd.f32 %v1628_v62, %v1960_v61  ;;  %v400_v0 = vpop.f32.mrb[1].mxu0 }
  0xe9   : > { %v401_v1 = vadd.f32 %v1960_v61, %v400_v0  ;;  %v1629_v2 = vpop.f32.mrb[2].mxu0 }
  0xea   : > { %v412_v3 = vadd.f32 %v1629_v2, %v1960_v61  ;;  %v403_v4 = vpop.f32.mrb[3].mxu0  ;;  %v529_v6 = vmax.f32 %v409_v63, 0.0 }
  0xeb   : > { %v404_v5 = vadd.f32 %v1960_v61, %v403_v4  ;;  %v527_v8 = vmax.f32 %v401_v1, 0.0 }
  0xec   : > { %v530_v7 = vmax.f32 %v412_v3, 0.0 }
  0xed   : > { %v528_v9 = vmax.f32 %v404_v5, 0.0 }
  0xee   : > { %v560_v10 = vpack.c.bf16 %v530_v7, %v529_v6 }
  0xef   : > { %v1632_v11 = vpop.f32.mrb[4].mxu0  ;;  %v559_v12 = vpack.c.bf16 %v528_v9, %v527_v8 }
  0xf0   : > { %v425_v13 = vadd.f32 %v1632_v11, %v1960_v61  ;;  %v416_v14 = vpop.f32.mrb[5].mxu0 }
  0xf1   : > { %v417_v15 = vadd.f32 %v1960_v61, %v416_v14  ;;  %v1633_v16 = vpop.f32.mrb[6].mxu0  ;;  %1674 = vmatprep.mubr.bf16.mxu1 %v559_v12 }
  0xf2   : > { %v428_v17 = vadd.f32 %v1633_v16, %v1960_v61  ;;  %v419_v18 = vpop.f32.mrb[7].mxu0  ;;  %1675 = vmatmul.mubr.bf16.vlgmr.msra.gmra.mrb[0].mxu1 %v560_v10  ;;  %v533_v20 = vmax.f32 %v425_v13, 0.0 }
  0xf3   : > { %v420_v19 = vadd.f32 %v1960_v61, %v419_v18  ;;  %v531_v22 = vmax.f32 %v417_v15, 0.0 }
  0xf4   : > { %v534_v21 = vmax.f32 %v428_v17, 0.0 }
  0xf5   : > { %v532_v23 = vmax.f32 %v420_v19, 0.0 }
  0xf6   : > { %v562_v24 = vpack.c.bf16 %v534_v21, %v533_v20 }
  0xf7   : > { %v561_v25 = vpack.c.bf16 %v532_v23, %v531_v22  ;;  %v1636_v26 = vpop.f32.mrb[8].mxu0 }
  0xf8   : > { %v441_v27 = vadd.f32 %v1636_v26, %v1960_v61  ;;  %v432_v28 = vpop.f32.mrb[9].mxu0 }
  0xf9   : > { %v433_v29 = vadd.f32 %v1960_v61, %v432_v28  ;;  %v1637_v30 = vpop.f32.mrb[10].mxu0  ;;  %1678 = vmatprep.mubr.bf16.mxu1 %v561_v25 }
  0xfa   : > { %v444_v31 = vadd.f32 %v1637_v30, %v1960_v61  ;;  %v435_v32 = vpop.f32.mrb[11].mxu0  ;;  %1679 = vmatmul.mubr.bf16.gmra.mrb[4].mxu1 %v562_v24  ;;  %v537_v34 = vmax.f32 %v441_v27, 0.0 }
  0xfb   : > { %v436_v33 = vadd.f32 %v1960_v61, %v435_v32  ;;  %v535_v36 = vmax.f32 %v433_v29, 0.0 }
  0xfc   : > { %v538_v35 = vmax.f32 %v444_v31, 0.0 }
  0xfd   : > { %v536_v37 = vmax.f32 %v436_v33, 0.0 }
  0xfe   : > { %v564_v38 = vpack.c.bf16 %v538_v35, %v537_v34 }
  0xff   : > { %v563_v39 = vpack.c.bf16 %v536_v37, %v535_v36  ;;  %v1640_v40 = vpop.f32.mrb[12].mxu0 }
 0x100   : > { %v457_v41 = vadd.f32 %v1640_v40, %v1960_v61  ;;  %v448_v42 = vpop.f32.mrb[13].mxu0 }
 0x101   : > { %v449_v43 = vadd.f32 %v1960_v61, %v448_v42  ;;  %v1641_v44 = vpop.f32.mrb[14].mxu0  ;;  %1682 = vmatprep.mubr.bf16.mxu1 %v563_v39 }
 0x102   : > { %v460_v45 = vadd.f32 %v1641_v44, %v1960_v61  ;;  %v451_v46 = vpop.f32.mrb[15].mxu0  ;;  %1683 = vmatmul.mubr.bf16.gmra.mrb[8].mxu1 %v564_v38  ;;  %v541_v48 = vmax.f32 %v457_v41, 0.0 }
 0x103   : > { %v452_v47 = vadd.f32 %v1960_v61, %v451_v46  ;;  %v539_v50 = vmax.f32 %v449_v43, 0.0 }
 0x104   : > { %v542_v49 = vmax.f32 %v460_v45, 0.0 }
 0x105   : > { %v540_v51 = vmax.f32 %v452_v47, 0.0  ;;  %v1807_v47 = vld [vmem:[%s2189_s4] sm:$0xff]  }
 0x106   : > { %v566_v52 = vpack.c.bf16 %v542_v49, %v541_v48  ;;  %1782 = vmatprep.subr.bf16.mxu1 %v1807_v47  ;;  %v1808_v48 = vld [vmem:[%s2189_s4 + $0x8] sm:$0xff]   ;;  %1746 = vmatprep.subr.bf16.mxu0 %v1807_v47 }
 0x107   : > { %v565_v53 = vpack.c.bf16 %v540_v51, %v539_v50  ;;  %v1644_v54 = vpop.f32.mrb[16].mxu0  ;;  %1784 = vmatpush3.bf16.msra.mxu1 %v1807_v47 }
 0x108   : > { %v473_v55 = vadd.f32 %v1644_v54, %v1960_v61  ;;  %v464_v56 = vpop.f32.mrb[17].mxu0  ;;  %1783 = vmatprep.subr.bf16.mxu1 %v1808_v48 }
 0x109   : > { %v465_v57 = vadd.f32 %v1960_v61, %v464_v56  ;;  %v1645_v58 = vpop.f32.mrb[18].mxu0  ;;  %1686 = vmatprep.mubr.bf16.mxu1 %v565_v53 }
 0x10a   : > { %v476_v59 = vadd.f32 %v1645_v58, %v1960_v61  ;;  %v467_v60 = vpop.f32.mrb[19].mxu0  ;;  %1687 = vmatmul.mubr.bf16.gmra.mrb[12].mxu1 %v566_v52  ;;  %v545_v63 = vmax.f32 %v473_v55, 0.0 }
 0x10b   : > { %v468_v62 = vadd.f32 %v1960_v61, %v467_v60  ;;  %v543_v1 = vmax.f32 %v465_v57, 0.0  ;;  %1785 = vmatpush3.bf16.msra.mxu1 %v1808_v48 }
 0x10c   : > { %v546_v0 = vmax.f32 %v476_v59, 0.0 }
 0x10d   : > { %v544_v2 = vmax.f32 %v468_v62, 0.0 }
 0x10e   : > { %v568_v3 = vpack.c.bf16 %v546_v0, %v545_v63 }
 0x10f   : > { %v567_v4 = vpack.c.bf16 %v544_v2, %v543_v1  ;;  %v1648_v5 = vpop.f32.mrb[20].mxu0 }
 0x110   : > { %v489_v6 = vadd.f32 %v1648_v5, %v1960_v61  ;;  %v480_v7 = vpop.f32.mrb[21].mxu0 }
 0x111   : > { %v481_v8 = vadd.f32 %v1960_v61, %v480_v7  ;;  %v1649_v9 = vpop.f32.mrb[22].mxu0  ;;  %1690 = vmatprep.mubr.bf16.mxu1 %v567_v4 }
 0x112   : > { %v492_v10 = vadd.f32 %v1649_v9, %v1960_v61  ;;  %v483_v11 = vpop.f32.mrb[23].mxu0  ;;  %1691 = vmatmul.mubr.bf16.gmra.mrb[16].mxu1 %v568_v3  ;;  %v549_v13 = vmax.f32 %v489_v6, 0.0 }
 0x113   : > { %v484_v12 = vadd.f32 %v1960_v61, %v483_v11  ;;  %v547_v15 = vmax.f32 %v481_v8, 0.0 }
 0x114   : > { %v550_v14 = vmax.f32 %v492_v10, 0.0 }
 0x115   : > { %v548_v16 = vmax.f32 %v484_v12, 0.0 }
 0x116   : > { %v570_v17 = vpack.c.bf16 %v550_v14, %v549_v13 }
 0x117   : > { %v569_v18 = vpack.c.bf16 %v548_v16, %v547_v15  ;;  %v1652_v19 = vpop.f32.mrb[24].mxu0 }
 0x118   : > { %v505_v20 = vadd.f32 %v1652_v19, %v1960_v61  ;;  %v496_v21 = vpop.f32.mrb[25].mxu0 }
 0x119   : > { %v497_v22 = vadd.f32 %v1960_v61, %v496_v21  ;;  %v1653_v23 = vpop.f32.mrb[26].mxu0  ;;  %1694 = vmatprep.mubr.bf16.mxu1 %v569_v18 }
 0x11a   : > { %v508_v24 = vadd.f32 %v1653_v23, %v1960_v61  ;;  %v499_v25 = vpop.f32.mrb[27].mxu0  ;;  %1695 = vmatmul.mubr.bf16.gmra.mrb[20].mxu1 %v570_v17  ;;  %v553_v27 = vmax.f32 %v505_v20, 0.0 }
 0x11b   : > { %v500_v26 = vadd.f32 %v1960_v61, %v499_v25  ;;  %v551_v29 = vmax.f32 %v497_v22, 0.0 }
 0x11c   : > { %v554_v28 = vmax.f32 %v508_v24, 0.0 }
 0x11d   : > { %v552_v30 = vmax.f32 %v500_v26, 0.0 }
 0x11e   : > { %v572_v31 = vpack.c.bf16 %v554_v28, %v553_v27 }
 0x11f   : > { %v571_v32 = vpack.c.bf16 %v552_v30, %v551_v29  ;;  %v1656_v33 = vpop.f32.mrb[28].mxu0 }
 0x120   : > { %v521_v34 = vadd.f32 %v1656_v33, %v1960_v61  ;;  %v512_v35 = vpop.f32.mrb[29].mxu0 }
 0x121   : > { %v513_v36 = vadd.f32 %v1960_v61, %v512_v35  ;;  %v1657_v37 = vpop.f32.mrb[30].mxu0  ;;  %1698 = vmatprep.mubr.bf16.mxu1 %v571_v32 }
 0x122   : > { %v524_v38 = vadd.f32 %v1657_v37, %v1960_v61  ;;  %v515_v39 = vpop.f32.mrb[31].mxu0  ;;  %1699 = vmatmul.mubr.bf16.gmra.mrb[24].mxu1 %v572_v31  ;;  %v557_v41 = vmax.f32 %v521_v34, 0.0 }
 0x123   : > { %v516_v40 = vadd.f32 %v1960_v61, %v515_v39  ;;  %v555_v43 = vmax.f32 %v513_v36, 0.0  ;;  %v2003_v61 = vld [vmem:[%s2190_s5 + $0x1] ss:$0 sm:$0xff] }
 0x124   : > { %v558_v42 = vmax.f32 %v524_v38, 0.0 }
 0x125   : > { %v556_v44 = vmax.f32 %v516_v40, 0.0 }
 0x126   : > { %v574_v45 = vpack.c.bf16 %v558_v42, %v557_v41 }
 0x127   : > { %v573_v46 = vpack.c.bf16 %v556_v44, %v555_v43 }
 0x129   : > { %1702 = vmatprep.mubr.bf16.mxu1 %v573_v46 }
 0x12a   : > { %1703 = vmatmul.mubr.bf16.gmra.mrb[28].mxu1 %v574_v45 }
 0x1c5   : > { %v1676_v49 = vpop.f32.mrb[0].mxu1 }
 0x1c6   : > { %v687_v50 = vadd.f32 %v1676_v49, %v2003_v61  ;;  %v678_v51 = vpop.f32.mrb[1].mxu1 }
 0x1c7   : > { %v679_v52 = vadd.f32 %v2003_v61, %v678_v51  ;;  %v1677_v53 = vpop.f32.mrb[2].mxu1 }
 0x1c8   : > { %v690_v54 = vadd.f32 %v1677_v53, %v2003_v61  ;;  %v681_v55 = vpop.f32.mrb[3].mxu1  ;;  %v807_v57 = vmax.f32 %v687_v50, 0.0 }
 0x1c9   : > { %v682_v56 = vadd.f32 %v2003_v61, %v681_v55  ;;  %v805_v59 = vmax.f32 %v679_v52, 0.0 }
 0x1ca   : > { %v808_v58 = vmax.f32 %v690_v54, 0.0 }
 0x1cb   : > { %v806_v60 = vmax.f32 %v682_v56, 0.0 }
 0x1cc   : > { %v838_v62 = vpack.c.bf16 %v808_v58, %v807_v57 }
 0x1cd   : > { %v837_v63 = vpack.c.bf16 %v806_v60, %v805_v59  ;;  %v1680_v0 = vpop.f32.mrb[4].mxu1 }
 0x1ce   : > { %v703_v1 = vadd.f32 %v1680_v0, %v2003_v61  ;;  %v694_v2 = vpop.f32.mrb[5].mxu1 }
 0x1cf   : > { %v695_v3 = vadd.f32 %v2003_v61, %v694_v2  ;;  %v1681_v4 = vpop.f32.mrb[6].mxu1  ;;  %1714 = vmatprep.mubr.msk.bf16.mxu0 %vm890_vm1, %v837_v63 }
 0x1d0   : > { %v706_v5 = vadd.f32 %v1681_v4, %v2003_v61  ;;  %v697_v6 = vpop.f32.mrb[7].mxu1  ;;  %1715 = vmatmul.mubr.msk.bf16.vlgmr.msra.gmra.mrb[32].mxu0 %vm890_vm1, %v838_v62  ;;  %v811_v8 = vmax.f32 %v703_v1, 0.0 }
 0x1d1   : > { %v698_v7 = vadd.f32 %v2003_v61, %v697_v6  ;;  %1747 = vmatpush3.bf16.msra.mxu0 %v1807_v47  ;;  %v809_v10 = vmax.f32 %v695_v3, 0.0 }
 0x1d2   : > { %v812_v9 = vmax.f32 %v706_v5, 0.0  ;;  %1748 = vmatprep.subr.bf16.mxu0 %v1808_v48 }
 0x1d3   : > { %v810_v11 = vmax.f32 %v698_v7, 0.0 }
 0x1d4   : > { %v840_v12 = vpack.c.bf16 %v812_v9, %v811_v8 }
 0x1d5   : > { %v839_v13 = vpack.c.bf16 %v810_v11, %v809_v10  ;;  %v1684_v14 = vpop.f32.mrb[8].mxu1  ;;  %1749 = vmatpush3.bf16.msra.mxu0 %v1808_v48 }
 0x1d6   : > { %v719_v15 = vadd.f32 %v1684_v14, %v2003_v61  ;;  %v710_v16 = vpop.f32.mrb[9].mxu1 }
 0x1d7   : > { %v711_v17 = vadd.f32 %v2003_v61, %v710_v16  ;;  %v1685_v18 = vpop.f32.mrb[10].mxu1  ;;  %1718 = vmatprep.mubr.msk.bf16.mxu0 %vm890_vm1, %v839_v13 }
 0x1d8   : > { %v722_v19 = vadd.f32 %v1685_v18, %v2003_v61  ;;  %v713_v20 = vpop.f32.mrb[11].mxu1  ;;  %1719 = vmatmul.mubr.msk.bf16.gmra.mrb[36].mxu0 %vm890_vm1, %v840_v12  ;;  %v815_v22 = vmax.f32 %v719_v15, 0.0 }
 0x1d9   : > { %v714_v21 = vadd.f32 %v2003_v61, %v713_v20  ;;  %v813_v24 = vmax.f32 %v711_v17, 0.0 }
 0x1da   : > { %v816_v23 = vmax.f32 %v722_v19, 0.0 }
 0x1db   : > { %v814_v25 = vmax.f32 %v714_v21, 0.0 }
 0x1dc   : > { %v842_v26 = vpack.c.bf16 %v816_v23, %v815_v22 }
 0x1dd   : > { %v841_v27 = vpack.c.bf16 %v814_v25, %v813_v24  ;;  %v1688_v28 = vpop.f32.mrb[12].mxu1 }
 0x1de   : > { %v735_v29 = vadd.f32 %v1688_v28, %v2003_v61  ;;  %v726_v30 = vpop.f32.mrb[13].mxu1 }
 0x1df   : > { %v727_v31 = vadd.f32 %v2003_v61, %v726_v30  ;;  %v1689_v32 = vpop.f32.mrb[14].mxu1  ;;  %1722 = vmatprep.mubr.msk.bf16.mxu0 %vm890_vm1, %v841_v27 }
 0x1e0   : > { %v738_v33 = vadd.f32 %v1689_v32, %v2003_v61  ;;  %v729_v34 = vpop.f32.mrb[15].mxu1  ;;  %1723 = vmatmul.mubr.msk.bf16.gmra.mrb[40].mxu0 %vm890_vm1, %v842_v26  ;;  %v819_v36 = vmax.f32 %v735_v29, 0.0 }
 0x1e1   : > { %v730_v35 = vadd.f32 %v2003_v61, %v729_v34  ;;  %v817_v38 = vmax.f32 %v727_v31, 0.0 }
 0x1e2   : > { %v820_v37 = vmax.f32 %v738_v33, 0.0 }
 0x1e3   : > { %v818_v39 = vmax.f32 %v730_v35, 0.0  ;;  %v2056_v35 = vld [vmem:[%s2190_s5 + $0x2] ss:$0 sm:$0xff] }
 0x1e4   : > { %v844_v40 = vpack.c.bf16 %v820_v37, %v819_v36 }
 0x1e5   : > { %v843_v41 = vpack.c.bf16 %v818_v39, %v817_v38  ;;  %v1692_v42 = vpop.f32.mrb[16].mxu1 }
 0x1e6   : > { %v751_v43 = vadd.f32 %v1692_v42, %v2003_v61  ;;  %v742_v44 = vpop.f32.mrb[17].mxu1 }
 0x1e7   : > { %v743_v45 = vadd.f32 %v2003_v61, %v742_v44  ;;  %v1693_v46 = vpop.f32.mrb[18].mxu1  ;;  %1726 = vmatprep.mubr.msk.bf16.mxu0 %vm890_vm1, %v843_v41 }
 0x1e8   : > { %v754_v47 = vadd.f32 %v1693_v46, %v2003_v61  ;;  %v745_v48 = vpop.f32.mrb[19].mxu1  ;;  %1727 = vmatmul.mubr.msk.bf16.gmra.mrb[44].mxu0 %vm890_vm1, %v844_v40  ;;  %v823_v50 = vmax.f32 %v751_v43, 0.0 }
 0x1e9   : > { %v746_v49 = vadd.f32 %v2003_v61, %v745_v48  ;;  %v821_v52 = vmax.f32 %v743_v45, 0.0 }
 0x1ea   : > { %v824_v51 = vmax.f32 %v754_v47, 0.0 }
 0x1eb   : > { %v822_v53 = vmax.f32 %v746_v49, 0.0 }
 0x1ec   : > { %v846_v54 = vpack.c.bf16 %v824_v51, %v823_v50 }
 0x1ed   : > { %v845_v55 = vpack.c.bf16 %v822_v53, %v821_v52  ;;  %v1696_v56 = vpop.f32.mrb[20].mxu1 }
 0x1ee   : > { %v767_v57 = vadd.f32 %v1696_v56, %v2003_v61  ;;  %v758_v58 = vpop.f32.mrb[21].mxu1 }
 0x1ef   : > { %v759_v59 = vadd.f32 %v2003_v61, %v758_v58  ;;  %v1697_v60 = vpop.f32.mrb[22].mxu1  ;;  %1730 = vmatprep.mubr.msk.bf16.mxu0 %vm890_vm1, %v845_v55 }
 0x1f0   : > { %v770_v62 = vadd.f32 %v1697_v60, %v2003_v61  ;;  %v761_v63 = vpop.f32.mrb[23].mxu1  ;;  %1731 = vmatmul.mubr.msk.bf16.gmra.mrb[48].mxu0 %vm890_vm1, %v846_v54  ;;  %v827_v1 = vmax.f32 %v767_v57, 0.0 }
 0x1f1   : > { %v762_v0 = vadd.f32 %v2003_v61, %v761_v63  ;;  %v825_v3 = vmax.f32 %v759_v59, 0.0 }
 0x1f2   : > { %v828_v2 = vmax.f32 %v770_v62, 0.0 }
 0x1f3   : > { %v826_v4 = vmax.f32 %v762_v0, 0.0 }
 0x1f4   : > { %v848_v5 = vpack.c.bf16 %v828_v2, %v827_v1 }
 0x1f5   : > { %v847_v6 = vpack.c.bf16 %v826_v4, %v825_v3  ;;  %v1700_v7 = vpop.f32.mrb[24].mxu1 }
 0x1f6   : > { %v783_v8 = vadd.f32 %v1700_v7, %v2003_v61  ;;  %v774_v9 = vpop.f32.mrb[25].mxu1 }
 0x1f7   : > { %v775_v10 = vadd.f32 %v2003_v61, %v774_v9  ;;  %v1701_v11 = vpop.f32.mrb[26].mxu1  ;;  %1734 = vmatprep.mubr.msk.bf16.mxu0 %vm890_vm1, %v847_v6 }
 0x1f8   : > { %v786_v12 = vadd.f32 %v1701_v11, %v2003_v61  ;;  %v777_v13 = vpop.f32.mrb[27].mxu1  ;;  %1735 = vmatmul.mubr.msk.bf16.gmra.mrb[52].mxu0 %vm890_vm1, %v848_v5  ;;  %v831_v15 = vmax.f32 %v783_v8, 0.0 }
 0x1f9   : > { %v778_v14 = vadd.f32 %v2003_v61, %v777_v13  ;;  %v829_v17 = vmax.f32 %v775_v10, 0.0 }
 0x1fa   : > { %v832_v16 = vmax.f32 %v786_v12, 0.0 }
 0x1fb   : > { %v830_v18 = vmax.f32 %v778_v14, 0.0 }
 0x1fc   : > { %v850_v19 = vpack.c.bf16 %v832_v16, %v831_v15 }
 0x1fd   : > { %v849_v20 = vpack.c.bf16 %v830_v18, %v829_v17  ;;  %v1704_v21 = vpop.f32.mrb[28].mxu1 }
 0x1fe   : > { %v799_v22 = vadd.f32 %v1704_v21, %v2003_v61  ;;  %v790_v23 = vpop.f32.mrb[29].mxu1 }
 0x1ff   : > { %v791_v24 = vadd.f32 %v2003_v61, %v790_v23  ;;  %v1705_v25 = vpop.f32.mrb[30].mxu1  ;;  %1738 = vmatprep.mubr.msk.bf16.mxu0 %vm890_vm1, %v849_v20 }
 0x200   : > { %v802_v26 = vadd.f32 %v1705_v25, %v2003_v61  ;;  %v793_v27 = vpop.f32.mrb[31].mxu1  ;;  %1739 = vmatmul.mubr.msk.bf16.gmra.mrb[56].mxu0 %vm890_vm1, %v850_v19  ;;  %v835_v29 = vmax.f32 %v799_v22, 0.0 }
 0x201   : > { %v794_v28 = vadd.f32 %v2003_v61, %v793_v27  ;;  %v833_v31 = vmax.f32 %v791_v24, 0.0 }
 0x202   : > { %v836_v30 = vmax.f32 %v802_v26, 0.0 }
 0x203   : > { %v834_v32 = vmax.f32 %v794_v28, 0.0 }
 0x204   : > { %v852_v33 = vpack.c.bf16 %v836_v30, %v835_v29 }
 0x205   : > { %v851_v34 = vpack.c.bf16 %v834_v32, %v833_v31 }
 0x207   : > { %1742 = vmatprep.mubr.msk.bf16.mxu0 %vm890_vm1, %v851_v34 }
 0x208   : > { %1743 = vmatmul.mubr.msk.bf16.gmra.mrb[60].mxu0 %vm890_vm1, %v852_v33 }
 0x2a3   : > { %v1716_v36 = vpop.f32.mrb[32].mxu0 }
 0x2a4   : > { %v982_v37 = vadd.f32 %v1716_v36, %v2056_v35  ;;  %v973_v38 = vpop.f32.mrb[33].mxu0 }
 0x2a5   : > { %v974_v61 = vadd.f32 %v2056_v35, %v973_v38  ;;  %v1717_v39 = vpop.f32.mrb[34].mxu0 }
 0x2a6   : > { %v985_v40 = vadd.f32 %v1717_v39, %v2056_v35  ;;  %v976_v41 = vpop.f32.mrb[35].mxu0  ;;  %v1102_v43 = vmax.f32 %v982_v37, 0.0 }
 0x2a7   : > { %v977_v42 = vadd.f32 %v2056_v35, %v976_v41  ;;  %v1100_v45 = vmax.f32 %v974_v61, 0.0 }
 0x2a8   : > { %v1103_v44 = vmax.f32 %v985_v40, 0.0 }
 0x2a9   : > { %v1101_v46 = vmax.f32 %v977_v42, 0.0 }
 0x2aa   : > { %v1133_v47 = vpack.c.bf16 %v1103_v44, %v1102_v43 }
 0x2ab   : > { %v1132_v48 = vpack.c.bf16 %v1101_v46, %v1100_v45  ;;  %v1720_v49 = vpop.f32.mrb[36].mxu0 }
 0x2ac   : > { %v998_v50 = vadd.f32 %v1720_v49, %v2056_v35  ;;  %v989_v51 = vpop.f32.mrb[37].mxu0 }
 0x2ad   : > { %v990_v52 = vadd.f32 %v2056_v35, %v989_v51  ;;  %v1721_v53 = vpop.f32.mrb[38].mxu0  ;;  %1750 = vmatprep.mubr.msk.bf16.mxu0 %vm1169_vm2, %v1132_v48 }
 0x2ae   : > { %v1001_v54 = vadd.f32 %v1721_v53, %v2056_v35  ;;  %v992_v55 = vpop.f32.mrb[39].mxu0  ;;  %1751 = vmatmul.mubr.msk.bf16.vlgmr.msra.gmra.mrb[64].mxu0 %vm1169_vm2, %v1133_v47  ;;  %v1106_v57 = vmax.f32 %v998_v50, 0.0 }
 0x2af   : > { %v993_v56 = vadd.f32 %v2056_v35, %v992_v55  ;;  %v1104_v59 = vmax.f32 %v990_v52, 0.0 }
 0x2b0   : > { %v1107_v58 = vmax.f32 %v1001_v54, 0.0 }
 0x2b1   : > { %v1105_v60 = vmax.f32 %v993_v56, 0.0 }
 0x2b2   : > { %v1135_v62 = vpack.c.bf16 %v1107_v58, %v1106_v57 }
 0x2b3   : > { %v1134_v63 = vpack.c.bf16 %v1105_v60, %v1104_v59  ;;  %v1724_v0 = vpop.f32.mrb[40].mxu0 }
 0x2b4   : > { %v1014_v1 = vadd.f32 %v1724_v0, %v2056_v35  ;;  %v1005_v2 = vpop.f32.mrb[41].mxu0 }
 0x2b5   : > { %v1006_v3 = vadd.f32 %v2056_v35, %v1005_v2  ;;  %v1725_v4 = vpop.f32.mrb[42].mxu0  ;;  %1754 = vmatprep.mubr.msk.bf16.mxu1 %vm1169_vm2, %v1134_v63 }
 0x2b6   : > { %v1017_v5 = vadd.f32 %v1725_v4, %v2056_v35  ;;  %v1008_v6 = vpop.f32.mrb[43].mxu0  ;;  %1755 = vmatmul.mubr.msk.bf16.vlgmr.msra.gmra.mrb[32].mxu1 %vm1169_vm2, %v1135_v62  ;;  %v1110_v8 = vmax.f32 %v1014_v1, 0.0 }
 0x2b7   : > { %v1009_v7 = vadd.f32 %v2056_v35, %v1008_v6  ;;  %v1108_v10 = vmax.f32 %v1006_v3, 0.0 }
 0x2b8   : > { %v1111_v9 = vmax.f32 %v1017_v5, 0.0 }
 0x2b9   : > { %v1109_v11 = vmax.f32 %v1009_v7, 0.0 }
 0x2ba   : > { %v1137_v12 = vpack.c.bf16 %v1111_v9, %v1110_v8 }
 0x2bb   : > { %v1136_v13 = vpack.c.bf16 %v1109_v11, %v1108_v10  ;;  %v1728_v14 = vpop.f32.mrb[44].mxu0 }
 0x2bc   : > { %v1030_v15 = vadd.f32 %v1728_v14, %v2056_v35  ;;  %v1021_v16 = vpop.f32.mrb[45].mxu0 }
 0x2bd   : > { %v1022_v17 = vadd.f32 %v2056_v35, %v1021_v16  ;;  %v1729_v18 = vpop.f32.mrb[46].mxu0  ;;  %1758 = vmatprep.mubr.msk.bf16.mxu1 %vm1169_vm2, %v1136_v13 }
 0x2be   : > { %v1033_v19 = vadd.f32 %v1729_v18, %v2056_v35  ;;  %v1024_v20 = vpop.f32.mrb[47].mxu0  ;;  %1759 = vmatmul.mubr.msk.bf16.gmra.mrb[36].mxu1 %vm1169_vm2, %v1137_v12  ;;  %v1114_v22 = vmax.f32 %v1030_v15, 0.0 }
 0x2bf   : > { %v1025_v21 = vadd.f32 %v2056_v35, %v1024_v20  ;;  %v1112_v24 = vmax.f32 %v1022_v17, 0.0 }
 0x2c0   : > { %v1115_v23 = vmax.f32 %v1033_v19, 0.0 }
 0x2c1   : > { %v1113_v25 = vmax.f32 %v1025_v21, 0.0  ;;  %v2109_v21 = vld [vmem:[%s2190_s5 + $0x3] ss:$0 sm:$0xff] }
 0x2c2   : > { %v1139_v26 = vpack.c.bf16 %v1115_v23, %v1114_v22 }
 0x2c3   : > { %v1138_v27 = vpack.c.bf16 %v1113_v25, %v1112_v24  ;;  %v1732_v28 = vpop.f32.mrb[48].mxu0 }
 0x2c4   : > { %v1046_v29 = vadd.f32 %v1732_v28, %v2056_v35  ;;  %v1037_v30 = vpop.f32.mrb[49].mxu0 }
 0x2c5   : > { %v1038_v31 = vadd.f32 %v2056_v35, %v1037_v30  ;;  %v1733_v32 = vpop.f32.mrb[50].mxu0  ;;  %1762 = vmatprep.mubr.msk.bf16.mxu1 %vm1169_vm2, %v1138_v27 }
 0x2c6   : > { %v1049_v33 = vadd.f32 %v1733_v32, %v2056_v35  ;;  %v1040_v34 = vpop.f32.mrb[51].mxu0  ;;  %1763 = vmatmul.mubr.msk.bf16.gmra.mrb[40].mxu1 %vm1169_vm2, %v1139_v26  ;;  %v1118_v37 = vmax.f32 %v1046_v29, 0.0 }
 0x2c7   : > { %v1041_v36 = vadd.f32 %v2056_v35, %v1040_v34  ;;  %v1116_v61 = vmax.f32 %v1038_v31, 0.0 }
 0x2c8   : > { %v1119_v38 = vmax.f32 %v1049_v33, 0.0 }
 0x2c9   : > { %v1117_v39 = vmax.f32 %v1041_v36, 0.0 }
 0x2ca   : > { %v1141_v40 = vpack.c.bf16 %v1119_v38, %v1118_v37 }
 0x2cb   : > { %v1140_v41 = vpack.c.bf16 %v1117_v39, %v1116_v61  ;;  %v1736_v42 = vpop.f32.mrb[52].mxu0 }
 0x2cc   : > { %v1062_v43 = vadd.f32 %v1736_v42, %v2056_v35  ;;  %v1053_v44 = vpop.f32.mrb[53].mxu0 }
 0x2cd   : > { %v1054_v45 = vadd.f32 %v2056_v35, %v1053_v44  ;;  %v1737_v46 = vpop.f32.mrb[54].mxu0  ;;  %1766 = vmatprep.mubr.msk.bf16.mxu1 %vm1169_vm2, %v1140_v41 }
 0x2ce   : > { %v1065_v47 = vadd.f32 %v1737_v46, %v2056_v35  ;;  %v1056_v48 = vpop.f32.mrb[55].mxu0  ;;  %1767 = vmatmul.mubr.msk.bf16.gmra.mrb[44].mxu1 %vm1169_vm2, %v1141_v40  ;;  %v1122_v50 = vmax.f32 %v1062_v43, 0.0 }
 0x2cf   : > { %v1057_v49 = vadd.f32 %v2056_v35, %v1056_v48  ;;  %v1120_v52 = vmax.f32 %v1054_v45, 0.0 }
 0x2d0   : > { %v1123_v51 = vmax.f32 %v1065_v47, 0.0 }
 0x2d1   : > { %v1121_v53 = vmax.f32 %v1057_v49, 0.0 }
 0x2d2   : > { %v1143_v54 = vpack.c.bf16 %v1123_v51, %v1122_v50 }
 0x2d3   : > { %v1142_v55 = vpack.c.bf16 %v1121_v53, %v1120_v52  ;;  %v1740_v56 = vpop.f32.mrb[56].mxu0 }
 0x2d4   : > { %v1078_v57 = vadd.f32 %v1740_v56, %v2056_v35  ;;  %v1069_v58 = vpop.f32.mrb[57].mxu0 }
 0x2d5   : > { %v1070_v59 = vadd.f32 %v2056_v35, %v1069_v58  ;;  %v1741_v60 = vpop.f32.mrb[58].mxu0  ;;  %1770 = vmatprep.mubr.msk.bf16.mxu1 %vm1169_vm2, %v1142_v55 }
 0x2d6   : > { %v1081_v62 = vadd.f32 %v1741_v60, %v2056_v35  ;;  %v1072_v63 = vpop.f32.mrb[59].mxu0  ;;  %1771 = vmatmul.mubr.msk.bf16.gmra.mrb[48].mxu1 %vm1169_vm2, %v1143_v54  ;;  %v1126_v1 = vmax.f32 %v1078_v57, 0.0 }
 0x2d7   : > { %v1073_v0 = vadd.f32 %v2056_v35, %v1072_v63  ;;  %v1124_v3 = vmax.f32 %v1070_v59, 0.0 }
 0x2d8   : > { %v1127_v2 = vmax.f32 %v1081_v62, 0.0 }
 0x2d9   : > { %v1125_v4 = vmax.f32 %v1073_v0, 0.0 }
 0x2da   : > { %v1145_v5 = vpack.c.bf16 %v1127_v2, %v1126_v1 }
 0x2db   : > { %v1144_v6 = vpack.c.bf16 %v1125_v4, %v1124_v3  ;;  %v1744_v7 = vpop.f32.mrb[60].mxu0 }
 0x2dc   : > { %v1094_v8 = vadd.f32 %v1744_v7, %v2056_v35  ;;  %v1085_v9 = vpop.f32.mrb[61].mxu0 }
 0x2dd   : > { %v1086_v10 = vadd.f32 %v2056_v35, %v1085_v9  ;;  %v1745_v11 = vpop.f32.mrb[62].mxu0  ;;  %1774 = vmatprep.mubr.msk.bf16.mxu1 %vm1169_vm2, %v1144_v6 }
 0x2de   : > { %v1097_v12 = vadd.f32 %v1745_v11, %v2056_v35  ;;  %v1088_v13 = vpop.f32.mrb[63].mxu0  ;;  %1775 = vmatmul.mubr.msk.bf16.gmra.mrb[52].mxu1 %vm1169_vm2, %v1145_v5  ;;  %v1130_v15 = vmax.f32 %v1094_v8, 0.0 }
 0x2df   : > { %v1089_v14 = vadd.f32 %v2056_v35, %v1088_v13  ;;  %v1128_v17 = vmax.f32 %v1086_v10, 0.0 }
 0x2e0   : > { %v1131_v16 = vmax.f32 %v1097_v12, 0.0 }
 0x2e1   : > { %v1129_v18 = vmax.f32 %v1089_v14, 0.0 }
 0x2e2   : > { %v1147_v19 = vpack.c.bf16 %v1131_v16, %v1130_v15 }
 0x2e3   : > { %v1146_v20 = vpack.c.bf16 %v1129_v18, %v1128_v17 }
 0x2e5   : > { %1778 = vmatprep.mubr.msk.bf16.mxu1 %vm1169_vm2, %v1146_v20 }
 0x2e6   : > { %1779 = vmatmul.mubr.msk.bf16.gmra.mrb[56].mxu1 %vm1169_vm2, %v1147_v19 }
 0x381   : > { %v1752_v35 = vpop.f32.mrb[64].mxu0 }
 0x382   : > { %v1261_v22 = vadd.f32 %v1752_v35, %v2109_v21  ;;  %v1252_v23 = vpop.f32.mrb[65].mxu0 }
 0x383   : > { %v1253_v24 = vadd.f32 %v2109_v21, %v1252_v23  ;;  %v1753_v25 = vpop.f32.mrb[66].mxu0 }
 0x384   : > { %1381 = vst [vmem:[%s2116_s24 + $0x10] sm:$0xff] %v1261_v22  ;;  %v1264_v26 = vadd.f32 %v1753_v25, %v2109_v21  ;;  %v1255_v27 = vpop.f32.mrb[67].mxu0 }
 0x385   : > { %1379 = vst [vmem:[%s2116_s24] sm:$0xff] %v1253_v24  ;;  %v1256_v28 = vadd.f32 %v2109_v21, %v1255_v27 }
 0x386   : > { %1382 = vst [vmem:[%s2116_s24 + $0x18] sm:$0xff] %v1264_v26 }
 0x387   : > { %1380 = vst [vmem:[%s2116_s24 + $0x8] sm:$0xff] %v1256_v28 }
 0x389   : > { %v1756_v29 = vpop.f32.mrb[32].mxu1 }
 0x38a   : > { %v1277_v30 = vadd.f32 %v1756_v29, %v2109_v21  ;;  %v1268_v31 = vpop.f32.mrb[33].mxu1 }
 0x38b   : > { %v1269_v32 = vadd.f32 %v2109_v21, %v1268_v31  ;;  %v1757_v33 = vpop.f32.mrb[34].mxu1 }
 0x38c   : > { %1385 = vst [vmem:[%s2116_s24 + $0x30] sm:$0xff] %v1277_v30  ;;  %v1280_v34 = vadd.f32 %v1757_v33, %v2109_v21  ;;  %v1271_v36 = vpop.f32.mrb[35].mxu1 }
 0x38d   : > { %1383 = vst [vmem:[%s2116_s24 + $0x20] sm:$0xff] %v1269_v32  ;;  %v1272_v37 = vadd.f32 %v2109_v21, %v1271_v36 }
 0x38e   : > { %1386 = vst [vmem:[%s2116_s24 + $0x38] sm:$0xff] %v1280_v34 }
 0x38f   : > { %1384 = vst [vmem:[%s2116_s24 + $0x28] sm:$0xff] %v1272_v37 }
 0x391   : > { %v1760_v38 = vpop.f32.mrb[36].mxu1 }
 0x392   : > { %v1293_v61 = vadd.f32 %v1760_v38, %v2109_v21  ;;  %v1284_v39 = vpop.f32.mrb[37].mxu1 }
 0x393   : > { %v1285_v40 = vadd.f32 %v2109_v21, %v1284_v39  ;;  %v1761_v41 = vpop.f32.mrb[38].mxu1 }
 0x394   : > { %1389 = vst [vmem:[%s2116_s24 + $0x50] sm:$0xff] %v1293_v61  ;;  %v1296_v42 = vadd.f32 %v1761_v41, %v2109_v21  ;;  %v1287_v43 = vpop.f32.mrb[39].mxu1 }
 0x395   : > { %1387 = vst [vmem:[%s2116_s24 + $0x40] sm:$0xff] %v1285_v40  ;;  %v1288_v44 = vadd.f32 %v2109_v21, %v1287_v43 }
 0x396   : > { %1390 = vst [vmem:[%s2116_s24 + $0x58] sm:$0xff] %v1296_v42 }
 0x397   : > { %1388 = vst [vmem:[%s2116_s24 + $0x48] sm:$0xff] %v1288_v44 }
 0x399   : > { %v1764_v45 = vpop.f32.mrb[40].mxu1 }
 0x39a   : > { %v1309_v46 = vadd.f32 %v1764_v45, %v2109_v21  ;;  %v1300_v47 = vpop.f32.mrb[41].mxu1 }
 0x39b   : > { %v1301_v48 = vadd.f32 %v2109_v21, %v1300_v47  ;;  %v1765_v49 = vpop.f32.mrb[42].mxu1 }
 0x39c   : > { %1393 = vst [vmem:[%s2116_s24 + $0x70] sm:$0xff] %v1309_v46  ;;  %v1312_v50 = vadd.f32 %v1765_v49, %v2109_v21  ;;  %v1303_v51 = vpop.f32.mrb[43].mxu1 }
 0x39d   : > { %1391 = vst [vmem:[%s2116_s24 + $0x60] sm:$0xff] %v1301_v48  ;;  %v1304_v52 = vadd.f32 %v2109_v21, %v1303_v51 }
 0x39e   : > { %1394 = vst [vmem:[%s2116_s24 + $0x78] sm:$0xff] %v1312_v50 }
 0x39f   : > { %1392 = vst [vmem:[%s2116_s24 + $0x68] sm:$0xff] %v1304_v52 }
 0x3a1   : > { %v1768_v53 = vpop.f32.mrb[44].mxu1 }
 0x3a2   : > { %v1325_v54 = vadd.f32 %v1768_v53, %v2109_v21  ;;  %v1316_v55 = vpop.f32.mrb[45].mxu1 }
 0x3a3   : > { %v1317_v56 = vadd.f32 %v2109_v21, %v1316_v55  ;;  %v1769_v57 = vpop.f32.mrb[46].mxu1 }
 0x3a4   : > { %1397 = vst [vmem:[%s2116_s24 + $0x90] sm:$0xff] %v1325_v54  ;;  %v1328_v58 = vadd.f32 %v1769_v57, %v2109_v21  ;;  %v1319_v59 = vpop.f32.mrb[47].mxu1 }
 0x3a5   : > { %1395 = vst [vmem:[%s2116_s24 + $0x80] sm:$0xff] %v1317_v56  ;;  %v1320_v60 = vadd.f32 %v2109_v21, %v1319_v59 }
 0x3a6   : > { %1398 = vst [vmem:[%s2116_s24 + $0x98] sm:$0xff] %v1328_v58 }
 0x3a7   : > { %1396 = vst [vmem:[%s2116_s24 + $0x88] sm:$0xff] %v1320_v60 }
 0x3a9   : > { %v1772_v62 = vpop.f32.mrb[48].mxu1 }
 0x3aa   : > { %v1341_v63 = vadd.f32 %v1772_v62, %v2109_v21  ;;  %v1332_v0 = vpop.f32.mrb[49].mxu1 }
 0x3ab   : > { %v1333_v1 = vadd.f32 %v2109_v21, %v1332_v0  ;;  %v1773_v2 = vpop.f32.mrb[50].mxu1 }
 0x3ac   : > { %1401 = vst [vmem:[%s2116_s24 + $0xb0] sm:$0xff] %v1341_v63  ;;  %v1344_v3 = vadd.f32 %v1773_v2, %v2109_v21  ;;  %v1335_v4 = vpop.f32.mrb[51].mxu1 }
 0x3ad   : > { %1399 = vst [vmem:[%s2116_s24 + $0xa0] sm:$0xff] %v1333_v1  ;;  %v1336_v5 = vadd.f32 %v2109_v21, %v1335_v4 }
 0x3ae   : > { %1402 = vst [vmem:[%s2116_s24 + $0xb8] sm:$0xff] %v1344_v3 }
 0x3af   : > { %1400 = vst [vmem:[%s2116_s24 + $0xa8] sm:$0xff] %v1336_v5 }
 0x3b1   : > { %v1776_v6 = vpop.f32.mrb[52].mxu1 }
 0x3b2   : > { %v1357_v7 = vadd.f32 %v1776_v6, %v2109_v21  ;;  %v1348_v8 = vpop.f32.mrb[53].mxu1 }
 0x3b3   : > { %v1349_v9 = vadd.f32 %v2109_v21, %v1348_v8  ;;  %v1777_v10 = vpop.f32.mrb[54].mxu1 }
 0x3b4   : > { %1405 = vst [vmem:[%s2116_s24 + $0xd0] sm:$0xff] %v1357_v7  ;;  %v1360_v11 = vadd.f32 %v1777_v10, %v2109_v21  ;;  %v1351_v12 = vpop.f32.mrb[55].mxu1 }
 0x3b5   : > { %1403 = vst [vmem:[%s2116_s24 + $0xc0] sm:$0xff] %v1349_v9  ;;  %v1352_v13 = vadd.f32 %v2109_v21, %v1351_v12 }
 0x3b6   : > { %1406 = vst [vmem:[%s2116_s24 + $0xd8] sm:$0xff] %v1360_v11 }
 0x3b7   : > { %1404 = vst [vmem:[%s2116_s24 + $0xc8] sm:$0xff] %v1352_v13 }
 0x3b9   : > { %v1780_v14 = vpop.f32.mrb[56].mxu1 }
 0x3ba   : > { %v1373_v15 = vadd.f32 %v1780_v14, %v2109_v21  ;;  %v1364_v16 = vpop.f32.mrb[57].mxu1 }
 0x3bb   : > { %v1365_v17 = vadd.f32 %v2109_v21, %v1364_v16  ;;  %v1781_v18 = vpop.f32.mrb[58].mxu1 }
 0x3bc   : > { %1409 = vst [vmem:[%s2116_s24 + $0xf0] sm:$0xff] %v1373_v15  ;;  %v1376_v19 = vadd.f32 %v1781_v18, %v2109_v21  ;;  %v1367_v20 = vpop.f32.mrb[59].mxu1 }
 0x3bd   : > { %1407 = vst [vmem:[%s2116_s24 + $0xe0] sm:$0xff] %v1365_v17  ;;  %v1368_v35 = vadd.f32 %v2109_v21, %v1367_v20 }
 0x3be   : > { %1410 = vst [vmem:[%s2116_s24 + $0xf8] sm:$0xff] %v1376_v19 }
 0x3bf   : > { %1408 = vst [vmem:[%s2116_s24 + $0xe8] sm:$0xff] %v1368_v35 }
 0x3c0 PF: > { %s16_s21 = sadd.s32 1, %s1815_s21  }
 0x3c1   : > { %p13_p4 = scmp.ge.s32.totalorder %s16_s21, 4  }
 0x3c3   :  { %15 = sbr.rel (!%p13_p4) target bundleno = 1 (0x1), region = 74 }

</bundles_post_ra>
